<compile_context>
chip_gen: v5e
topology: v5e:2x2
jax: 0.10.0
libtpu: 0.0.40
codegen_flags: <defaults>
</compile_context>

<pallas_src>
import functools

import jax
import jax.numpy as jnp
from jax.experimental import pallas as pl
from jax.experimental.pallas import tpu as pltpu

_LANES = 128
_MAX_TILE_ROWS = 2048   # (2048, 128) i32 tile = 1 MiB; in+out double-buffered ~4 MiB


def _cdiv(a, b):
    return (a + b - 1) // b


def _round_up(v, m):
    return _cdiv(v, m) * m


def _rotated_sender_kernel(x_ref, msg_ref, *, n_values: int):
    """x_ref/msg_ref: [tile_rows, 128] int32 views of the flat interleaved [B, 2] data.

    Flat lane 2k holds x[k, 0], lane 2k+1 holds x[k, 1]; since 128 is even,
    a (x0, x1) pair never straddles a row boundary, so a lane rotation within
    each 128-lane row always pairs the right elements.
    """
    x = x_ref[...]
    nxt = pltpu.roll(x, shift=_LANES - 1, axis=1)   # lane c -> value at lane c+1
    prv = pltpu.roll(x, shift=1, axis=1)            # lane c -> value at lane c-1
    lane = jax.lax.broadcasted_iota(jnp.int32, x.shape, dimension=1)
    is_even = (lane & 1) == 0
    s = x + nxt                       # valid at even lanes: x0 + x1      in [0, 2n-2]
    d = (prv - x) + n_values          # valid at odd lanes:  n + x0 - x1  in [1, 2n-1]
    val = jnp.where(is_even, s, d)
    # fmod without integer division; exact because inputs are in [0, n_values).
    msg = jnp.where(val >= n_values, val - n_values, val)
    msg_ref[...] = msg + 1            # single unmasked full-block store


def rotated_sender_forward(x, n_values: int):
    """x: [B, 2] integer attributes in [0, n_values). Returns (message + 1, zeros, zeros)."""
    B, A = x.shape
    assert A == 2, "RotatedSender only supports n_attributes == 2"

    flat = x.astype(jnp.int32).reshape(-1)          # [2B]; free view of row-major data
    n = flat.shape[0]

    rows0 = _cdiv(n, _LANES)
    if rows0 <= _MAX_TILE_ROWS:
        n_steps, tile_rows = 1, rows0               # one step; block == full array dims
    else:
        n_steps = _cdiv(rows0, _MAX_TILE_ROWS)      # >= 2 steps -> megacore on v7x
        tile_rows = _round_up(_cdiv(rows0, n_steps), 8)
    rows = n_steps * tile_rows
    n_pad = rows * _LANES
    if n_pad != n:
        flat = jnp.pad(flat, (0, n_pad - n))        # tail pad only (< 1 tile of waste)
    x2d = flat.reshape(rows, _LANES)                # lane-dense slab; free reshape

    kernel = functools.partial(_rotated_sender_kernel, n_values=n_values)
    msg2d = pl.pallas_call(
        kernel,
        out_shape=jax.ShapeDtypeStruct((rows, _LANES), jnp.int32),
        grid=(n_steps,),
        in_specs=[pl.BlockSpec((tile_rows, _LANES), lambda i: (i, 0))],
        out_specs=pl.BlockSpec((tile_rows, _LANES), lambda i: (i, 0)),
        compiler_params=pltpu.CompilerParams(
            dimension_semantics=("parallel",),      # shard steps across TCs on v7x
        ),
        cost_estimate=pl.CostEstimate(
            flops=6 * n_pad,
            transcendentals=0,
            bytes_accessed=8 * n_pad,               # 4B read + 4B write per element
        ),
    )(x2d)

    flat_msg = msg2d.reshape(-1)
    if n_pad != n:
        flat_msg = flat_msg[:n]
    message = flat_msg.reshape(B, 2)
    # TODO(synk): PyTorch returns int64 ("long"); JAX's default x64-disabled config keeps int32.
    zeros = jnp.zeros((B, 2), jnp.float32)          # constant-folded by XLA, returned twice
    return message, zeros, zeros


class RotatedSenderPallas:
    def __init__(self, n_attributes, n_values):
        self.n_attributes = n_attributes
        self.n_values = n_values

    def __call__(self, x, aux_input=None):
        return rotated_sender_forward(x, self.n_values)

    def reference(self, x):
        """Pure-JAX reference for correctness checking."""
        xi = x.astype(jnp.int32)
        m0 = jnp.mod(xi[:, 0] + xi[:, 1], self.n_values)
        m1 = jnp.mod(self.n_values + xi[:, 0] - xi[:, 1], self.n_values)
        message = jnp.stack([m0, m1], axis=1) + 1
        zeros = jnp.zeros((x.shape[0], 2), jnp.float32)
        return message, zeros, zeros


if __name__ == "__main__":
    key = jax.random.PRNGKey(0)
    batch, n_attributes, n_values = 8, 2, 10
    x = jax.random.randint(key, (batch, n_attributes), 0, n_values, dtype=jnp.int32)

    sender = RotatedSenderPallas(n_attributes, n_values)
    msg, z0, z1 = jax.block_until_ready(sender(x, None))
    ref_msg, ref_z0, ref_z1 = sender.reference(x)

    assert msg.shape == (batch, 2) and msg.dtype == jnp.int32
    assert z0.shape == (batch, 2) and z1.shape == (batch, 2)
    assert jnp.array_equal(msg, ref_msg), (msg, ref_msg)
    assert jnp.array_equal(z0, ref_z0)
    assert jnp.array_equal(z1, ref_z1)

    # Also exercise a larger, non-aligned batch (pads to a multiple of 128 lanes).
    x_big = jax.random.randint(jax.random.PRNGKey(1), (1000, 2), 0, n_values, dtype=jnp.int32)
    msg_b, zb0, zb1 = jax.block_until_ready(sender(x_big, None))
    ref_b, _, _ = sender.reference(x_big)
    assert jnp.array_equal(msg_b, ref_b)

    print("KERNEL_OK")
</pallas_src>

<mosaic_0001>
module attributes {stable_mosaic.version = 11 : i64} {
  func.func @_rotated_sender_kernel(%arg0: i32, %arg1: memref<1x128xi32, #tpu.memory_space<vmem>>, %arg2: memref<1x128xi32, #tpu.memory_space<vmem>>) attributes {dimension_semantics = [#tpu.dimension_semantics<parallel>], iteration_bounds = array<i64: 1>, scalar_prefetch = 0 : i64, scratch_operands = 0 : i64, tpu.core_type = #tpu.core_type<tc>, window_params = [{transform_indices = @transform_0, window_bounds = array<i64: 1, 128>}, {transform_indices = @transform_1, window_bounds = array<i64: 1, 128>}]} {
    %c0 = arith.constant 0 : index
    %c0_0 = arith.constant 0 : index
    %0 = vector.load %arg1[%c0, %c0_0] : memref<1x128xi32, #tpu.memory_space<vmem>>, vector<1x128xi32>
    %c127_i32 = arith.constant 127 : i32
    %1 = tpu.dynamic_rotate %0 by %c127_i32 dim 1 : vector<1x128xi32>, i32 -> vector<1x128xi32>
    %c1_i32 = arith.constant 1 : i32
    %2 = tpu.dynamic_rotate %0 by %c1_i32 dim 1 : vector<1x128xi32>, i32 -> vector<1x128xi32>
    %3 = tpu.iota {dimensions = array<i32: 1>} : vector<1x128xi32>
    %c1_i32_1 = arith.constant 1 : i32
    %4 = vector.broadcast %c1_i32_1 : i32 to vector<1x128xi32>
    %5 = arith.andi %3, %4 : vector<1x128xi32>
    %c0_i32 = arith.constant 0 : i32
    %6 = vector.broadcast %c0_i32 : i32 to vector<1x128xi32>
    %7 = arith.cmpi eq, %5, %6 : vector<1x128xi32>
    %8 = arith.addi %0, %1 : vector<1x128xi32>
    %9 = arith.subi %2, %0 : vector<1x128xi32>
    %c10_i32 = arith.constant 10 : i32
    %10 = vector.broadcast %c10_i32 : i32 to vector<1x128xi32>
    %11 = arith.addi %9, %10 : vector<1x128xi32>
    %12 = arith.select %7, %8, %11 : vector<1x128xi1>, vector<1x128xi32>
    %c10_i32_2 = arith.constant 10 : i32
    %13 = vector.broadcast %c10_i32_2 : i32 to vector<1x128xi32>
    %14 = arith.cmpi sge, %12, %13 : vector<1x128xi32>
    %c10_i32_3 = arith.constant 10 : i32
    %15 = vector.broadcast %c10_i32_3 : i32 to vector<1x128xi32>
    %16 = arith.subi %12, %15 : vector<1x128xi32>
    %17 = arith.select %14, %16, %12 : vector<1x128xi1>, vector<1x128xi32>
    %c1_i32_4 = arith.constant 1 : i32
    %18 = vector.broadcast %c1_i32_4 : i32 to vector<1x128xi32>
    %19 = arith.addi %17, %18 : vector<1x128xi32>
    %c0_5 = arith.constant 0 : index
    %c0_6 = arith.constant 0 : index
    %20 = vector.load %arg2[%c0_5, %c0_6] : memref<1x128xi32, #tpu.memory_space<vmem>>, vector<1x128xi32>
    tpu.vector_store %arg2[%c0_5, %c0_6], %19 {strides = array<i32>} : memref<1x128xi32, #tpu.memory_space<vmem>>, vector<1x128xi32>,
    return
  }
  func.func @transform_0(%arg0: i32) -> (i32, i32) {
    %c0_i32 = arith.constant 0 : i32
    %c0_i32_0 = arith.constant 0 : i32
    return %arg0, %c0_i32 : i32, i32
  }
  func.func @transform_1(%arg0: i32) -> (i32, i32) {
    %c0_i32 = arith.constant 0 : i32
    %c0_i32_0 = arith.constant 0 : i32
    return %arg0, %c0_i32 : i32, i32
  }
}

</mosaic_0001>

<bundles_post_ra>
// kernel: tpu_custom_call.1
= control target key start
LH: loop header
LB: loop body
LE: loop exit
PB: predicated region body
PF: predicated region fallthrough
CT: control target
= control target key end

     0   :  { %6 = vsyncpa [#allocation3], 0  ;;  %s135_s0 = inlined_call_operand.hbm [shape: s32[1,128], index: 0, kind: input, shape index: {}]   ;;  %s136_s1 = inlined_call_operand.hbm [shape: s32[1,128], index: 1, kind: output, shape index: {}]  }
   0x1   :  { %7 = vsyncpa [#allocation4], 0  ;;  %s13_s8 = sshll.u32 %s135_s0, 4  ;;  %s115_s9 = smov [#allocation2]   ;;  %s14_s8 = int_to_ptr.hbm [resolvable:$true] %s13_s8 }
   0x2   :  { %s15_s10 = sshll.u32 %s115_s9, 4  ;;  %s16_s10 = int_to_ptr.vmem [resolvable:$true] %s15_s10 }
   0x3   :  { %18 = dma.hbm_to_vmem [thread:$0]  %s14_s8, 16, %s16_s10, [#allocation3]  }
   0x4   :  { %111 = dma.done.wait [#allocation3], 16  }
   0x5   :  { %112 = vsyncadd [#allocation3], 4294967280  ;;  %v23_v0 = vld [vmem:[#allocation2] sm:$0x1]  ;;  %s116_s11 = smov 1   ;;  %s117_s12 = smov 127   ;;  %v28_v1 = vlaneseq }
   0x6   :  { %26 = vrot.lane.b32.xlu0 %v23_v0, %s116_s11  ;;  %s118_s0 = smov [#allocation5]   ;;  %s48_s16 = sshll.u32 %s136_s1, 4  ;;  %s49_s16 = int_to_ptr.hbm [resolvable:$true] %s48_s16 }
   0x7   :  { %v29_v3 = vand.u32 127, %v28_v1  ;;  %s46_s13 = sshll.u32 %s118_s0, 4  ;;  %s47_s13 = int_to_ptr.vmem [resolvable:$true] %s46_s13 }
   0x9   :  { %v30_v4 = vand.u32 1, %v29_v3 }
   0xb   :  { %vm31_vm0 = vcmp.eq.s32.totalorder %v30_v4, 0 }
   0xe   :  { %24 = vrot.lane.b32.xlu0 %v23_v0, %s117_s12 }
  0x78   :  { %v27_v2 = vpop.permute.xlu0 %26 }
  0x79   :  { %v33_v5 = vsub.s32 %v27_v2, %v23_v0 }
  0x7b   :  { %v34_v7 = vadd.s32 10, %v33_v5 }
  0x80   :  { %v25_v6 = vpop.permute.xlu0 %24 }
  0x81   :  { %v32_v8 = vadd.s32 %v25_v6, %v23_v0 }
  0x83   :  { %v35_v9 = vsel %vm31_vm0, %v32_v8, %v34_v7 }
  0x84   :  { %vm36_vm1 = vcmp.ge.s32.totalorder %v35_v9, 10  ;;  %v58_v10 = vadd.s32 4294967286, %v35_v9 }
  0x86   :  { %v38_v11 = vsel %vm36_vm1, %v58_v10, %v35_v9 }
  0x87   :  { %v39_v12 = vadd.s32 1, %v38_v11 }
  0x89   :  { %40 = vst [vmem:[#allocation5] sm:$0x1] %v39_v12 }
  0x8a   :  { %51 = dma.vmem_to_hbm [thread:$0]  %s47_s13, 16, %s49_s16, [#allocation4]  }
  0x8b   :  { %113 = dma.done.wait [#allocation4], 16  }
  0x8c   :  { %114 = vsyncadd [#allocation4], 4294967280 }
  0x8d   :  { %56 = vsyncpa [#allocation3], 1 }
  0x8e   :  { %57 = vsyncpa [#allocation4], 1 }

</bundles_post_ra>
